<compile_context>
chip_gen: v7x
topology: tpu7x:2x2x1
jax: 0.10.0
libtpu: 0.0.40
codegen_flags: <defaults>
</compile_context>

<pallas_src>
import functools

import jax
import jax.numpy as jnp
from jax import lax
from jax.experimental import pallas as pl
from jax.experimental.pallas import tpu as pltpu

ITER_ROUTING = 3
_LANE = 128


def _round_up(x, m):
    return (x + m - 1) // m * m


def _choose_tile_c(C, K, Hp, vmem_budget_bytes=24 * 1024 * 1024):
    """Largest capsule tile that divides C, satisfies the (8,128) rule on the
    (TILE_C, Hp) output block, and keeps the per-block VMEM footprint
    (double-buffered x block + x_hat scratch + weight + output) under a budget
    that is conservative even for v7x's 64 MiB VMEM."""
    def vmem_need(tc):
        x_blk = tc * K * Hp * 4
        out_blk = tc * Hp * 4
        w_blk = Hp * Hp * 4
        return 2 * x_blk + x_blk + 2 * out_blk + 2 * w_blk

    candidates = [tc for tc in (512, 256, 128, 64, 32, 16, 8) if C % tc == 0]
    for tc in candidates:
        if vmem_need(tc) <= vmem_budget_bytes:
            return tc
    if candidates:
        return candidates[-1]
    return C  # C not a multiple of 8: use a single full block (small-C case).


def _dynamic_routing_kernel(x_ref, w_ref, c_ref, xhat_ref, *, iter_routing):
    # x_ref   : (TILE_C, K, Hp)  padded encoder_output block
    # w_ref   : (Hp, Hp)         padded weight, nn.Linear (out, in) layout
    # c_ref   : (TILE_C, Hp)     output capsules for this block
    # xhat_ref: (TILE_C, K, Hp)  VMEM scratch holding the projected block
    TC, K, Hp = x_ref.shape

    # Loop-invariant projection: x_hat = x @ W^T (single MXU matmul per block).
    # Contract x's H with W's "in" dim directly so no transpose is needed.
    xhat_ref[...] = lax.dot_general(
        x_ref[...].reshape(TC * K, Hp), w_ref[...],
        dimension_numbers=(((1,), (1,)), ((), ())),
        preferred_element_type=jnp.float32,
    ).reshape(TC, K, Hp)
    x_hat = xhat_ref[...]

    b = jnp.zeros((TC, 1, K), jnp.float32)
    c = jnp.zeros((TC, 1, Hp), jnp.float32)

    # iter_routing is a small static constant (3): keep the loop unrolled.
    for _ in range(iter_routing):
        # d = softmax(b, dim=-1) over the K routing logits of each capsule.
        b_max = jnp.max(b, axis=-1, keepdims=True)
        e = jnp.exp(b - b_max)
        d = e / jnp.sum(e, axis=-1, keepdims=True)               # (TC, 1, K)

        # c_hat[c, h] = sum_k d[c, k] * x_hat[c, k, h]  -> batched MXU matmul.
        c_hat = jnp.einsum("cqk,ckh->cqh", d, x_hat,
                           preferred_element_type=jnp.float32)   # (TC, 1, Hp)

        # Fused squash: c = (sqrt(norm) / (1 + norm)) * c_hat.
        norm = jnp.sum(c_hat * c_hat, axis=-1, keepdims=True)    # (TC, 1, 1)
        f = norm * lax.rsqrt(norm + 1e-12) / (1.0 + norm)
        c = f * c_hat                                            # (TC, 1, Hp)

        # b[c, k] += sum_h x_hat[c, k, h] * c[c, h]     -> batched MXU matmul.
        b = b + jnp.einsum("cqh,ckh->cqk", c, x_hat,
                           preferred_element_type=jnp.float32)   # (TC, 1, K)

    c_ref[...] = c[:, 0, :]


def dynamic_routing(encoder_output, weight, iter_routing=ITER_ROUTING, tile_c=None):
    """encoder_output: (C, K, H) f32; weight: (H, H) f32, nn.Linear (out, in) layout."""
    C, K, H = encoder_output.shape
    Hp = _round_up(H, _LANE)

    # Lane-dense padding of the hidden axis (zeros are exact no-ops everywhere).
    x_p = jnp.pad(encoder_output.astype(jnp.float32),
                  ((0, 0), (0, 0), (0, Hp - H)))
    w_p = jnp.pad(weight.astype(jnp.float32),
                  ((0, Hp - H), (0, Hp - H)))

    if tile_c is None:
        tile_c = _choose_tile_c(C, K, Hp)
    assert C % tile_c == 0 and (tile_c % 8 == 0 or tile_c == C)
    grid = (C // tile_c,)

    flops = 2 * C * K * Hp * Hp + iter_routing * 4 * C * K * Hp
    transcendentals = iter_routing * C * (K + 1)
    bytes_accessed = 4 * (C * K * Hp + Hp * Hp + C * Hp)

    kernel = functools.partial(_dynamic_routing_kernel, iter_routing=iter_routing)
    out_p = pl.pallas_call(
        kernel,
        out_shape=jax.ShapeDtypeStruct((C, Hp), jnp.float32),
        grid_spec=pltpu.PrefetchScalarGridSpec(
            num_scalar_prefetch=0,
            grid=grid,
            in_specs=[
                pl.BlockSpec((tile_c, K, Hp), lambda i: (i, 0, 0),
                             memory_space=pltpu.MemorySpace.VMEM),
                pl.BlockSpec((Hp, Hp), lambda i: (0, 0),
                             memory_space=pltpu.MemorySpace.VMEM),
            ],
            out_specs=pl.BlockSpec((tile_c, Hp), lambda i: (i, 0),
                                   memory_space=pltpu.MemorySpace.VMEM),
            scratch_shapes=[pltpu.VMEM((tile_c, K, Hp), jnp.float32)],
        ),
        compiler_params=pltpu.CompilerParams(
            dimension_semantics=("parallel",),
            vmem_limit_bytes=32 * 1024 * 1024,
        ),
        cost_estimate=pl.CostEstimate(
            flops=int(flops),
            transcendentals=int(transcendentals),
            bytes_accessed=int(bytes_accessed)),
    )(x_p, w_p)
    return out_p[:, :H]


def _reference(encoder_output, weight, iter_routing=ITER_ROUTING):
    """Pure-JAX reference mirroring the PyTorch forward exactly."""
    C, K, H = encoder_output.shape
    b = jnp.zeros((C, K), jnp.float32)
    c = None
    for _ in range(iter_routing):
        d = jax.nn.softmax(b, axis=-1)
        x_hat = jnp.einsum("ckh,dh->ckd", encoder_output, weight)
        c_hat = jnp.sum(x_hat * d[:, :, None], axis=1)
        norm = jnp.sum(c_hat * c_hat, axis=-1)
        scale = norm / (1.0 + norm)
        c = scale[:, None] * c_hat / jnp.sqrt(norm)[:, None]
        b = b + jnp.einsum("ckh,ch->ck", x_hat, c)
    return c


if __name__ == "__main__":
    key = jax.random.PRNGKey(0)

    # Test 1: small shapes consistent with (C, K, hidden_size); single block.
    C, K, H = 4, 8, 32
    k_x, k_w, k_x2 = jax.random.split(key, 3)
    encoder_output = jax.random.normal(k_x, (C, K, H), dtype=jnp.float32)
    # nn.Linear(H, H, bias=False) default init: U(-1/sqrt(H), 1/sqrt(H))
    bound = 1.0 / (H ** 0.5)
    weight = jax.random.uniform(k_w, (H, H), minval=-bound, maxval=bound,
                                dtype=jnp.float32)

    out = jax.block_until_ready(dynamic_routing(encoder_output, weight))
    ref = _reference(encoder_output, weight)
    assert out.shape == (C, H)
    assert jnp.allclose(out, ref, atol=1e-4, rtol=1e-4)

    # Test 2: exercise the multi-block grid over C (tile_c=8 -> grid=(2,)).
    C2 = 16
    encoder_output2 = jax.random.normal(k_x2, (C2, K, H), dtype=jnp.float32)
    out2 = jax.block_until_ready(
        dynamic_routing(encoder_output2, weight, tile_c=8))
    ref2 = _reference(encoder_output2, weight)
    assert out2.shape == (C2, H)
    assert jnp.allclose(out2, ref2, atol=1e-4, rtol=1e-4)

    print("KERNEL_OK")
</pallas_src>

<mosaic_0001>
module attributes {stable_mosaic.version = 11 : i64} {
  func.func @_dynamic_routing_kernel(%arg0: i32, %arg1: memref<4x8x128xf32, #tpu.memory_space<vmem>>, %arg2: memref<128x128xf32, #tpu.memory_space<vmem>>, %arg3: memref<4x128xf32, #tpu.memory_space<vmem>>, %arg4: memref<4x8x128xf32, #tpu.memory_space<vmem>>) attributes {dimension_semantics = [#tpu.dimension_semantics<parallel>], iteration_bounds = array<i64: 1>, scalar_prefetch = 0 : i64, scratch_operands = 1 : i64, tpu.core_type = #tpu.core_type<tc>, window_params = [{transform_indices = @transform_0, window_bounds = array<i64: 4, 8, 128>}, {pipeline_mode = #tpu.pipeline_mode<synchronous>, transform_indices = @transform_1, window_bounds = array<i64: 128, 128>}, {transform_indices = @transform_2, window_bounds = array<i64: 4, 128>}]} {
    %c0 = arith.constant 0 : index
    %c0_0 = arith.constant 0 : index
    %c0_1 = arith.constant 0 : index
    %0 = vector.load %arg1[%c0, %c0_0, %c0_1] : memref<4x8x128xf32, #tpu.memory_space<vmem>>, vector<4x8x128xf32>
    %1 = vector.shape_cast %0 : vector<4x8x128xf32> to vector<32x128xf32>
    %c0_2 = arith.constant 0 : index
    %c0_3 = arith.constant 0 : index
    %2 = vector.load %arg2[%c0_2, %c0_3] : memref<128x128xf32, #tpu.memory_space<vmem>>, vector<128x128xf32>
    %cst = arith.constant dense<0.000000e+00> : vector<32x128xf32>
    %3 = tpu.matmul %1, %2, %cst {dimension_numbers = #tpu.dot_dimension_numbers<[1], [1], [0], [0], [0, 0, 1, 0], [], []>} : vector<32x128xf32>, vector<128x128xf32>, vector<32x128xf32> -> vector<32x128xf32>
    %4 = vector.shape_cast %3 : vector<32x128xf32> to vector<4x8x128xf32>
    %c0_4 = arith.constant 0 : index
    %c0_5 = arith.constant 0 : index
    %c0_6 = arith.constant 0 : index
    %5 = vector.load %arg4[%c0_4, %c0_5, %c0_6] : memref<4x8x128xf32, #tpu.memory_space<vmem>>, vector<4x8x128xf32>
    tpu.vector_store %arg4[%c0_4, %c0_5, %c0_6], %4 {strides = array<i32>} : memref<4x8x128xf32, #tpu.memory_space<vmem>>, vector<4x8x128xf32>,
    %c0_7 = arith.constant 0 : index
    %c0_8 = arith.constant 0 : index
    %c0_9 = arith.constant 0 : index
    %6 = vector.load %arg4[%c0_7, %c0_8, %c0_9] : memref<4x8x128xf32, #tpu.memory_space<vmem>>, vector<4x8x128xf32>
    %cst_10 = arith.constant 0.000000e+00 : f32
    %7 = vector.broadcast %cst_10 : f32 to vector<4x1x8xf32>
    %cst_11 = arith.constant dense<0xFF800000> : vector<4x1xf32>
    %8 = vector.multi_reduction <maximumf>, %7, %cst_11 [2] : vector<4x1x8xf32> to vector<4x1xf32>
    %9 = vector.shape_cast %8 : vector<4x1xf32> to vector<4x1x1xf32>
    %10 = vector.broadcast %9 : vector<4x1x1xf32> to vector<4x1x8xf32>
    %11 = arith.subf %7, %10 : vector<4x1x8xf32>
    %12 = math.exp %11 : vector<4x1x8xf32>
    %cst_12 = arith.constant dense<0.000000e+00> : vector<4x1xf32>
    %13 = vector.multi_reduction <add>, %12, %cst_12 [2] : vector<4x1x8xf32> to vector<4x1xf32>
    %14 = vector.shape_cast %13 : vector<4x1xf32> to vector<4x1x1xf32>
    %15 = vector.broadcast %14 : vector<4x1x1xf32> to vector<4x1x8xf32>
    %16 = arith.divf %12, %15 : vector<4x1x8xf32>
    "tpu.trace_start"() <{level = 10 : i32, message = "cqk,ckh->cqh"}> : () -> ()
    %cst_13 = arith.constant dense<0.000000e+00> : vector<4x1x128xf32>
    %17 = tpu.matmul %16, %6, %cst_13 {dimension_numbers = #tpu.dot_dimension_numbers<[2], [1], [1], [2], [0, 0, 0, 1, 1, 2], [0], [0]>} : vector<4x1x8xf32>, vector<4x8x128xf32>, vector<4x1x128xf32> -> vector<4x1x128xf32>
    "tpu.trace_stop"() : () -> ()
    %18 = arith.mulf %17, %17 : vector<4x1x128xf32>
    %cst_14 = arith.constant dense<0.000000e+00> : vector<4x1xf32>
    %19 = vector.multi_reduction <add>, %18, %cst_14 [2] : vector<4x1x128xf32> to vector<4x1xf32>
    %20 = vector.shape_cast %19 : vector<4x1xf32> to vector<4x1x1xf32>
    %cst_15 = arith.constant 9.99999996E-13 : f32
    %21 = vector.broadcast %cst_15 : f32 to vector<4x1x1xf32>
    %22 = arith.addf %20, %21 : vector<4x1x1xf32>
    %23 = math.rsqrt %22 : vector<4x1x1xf32>
    %24 = arith.mulf %20, %23 : vector<4x1x1xf32>
    %cst_16 = arith.constant 1.000000e+00 : f32
    %25 = vector.broadcast %cst_16 : f32 to vector<4x1x1xf32>
    %26 = arith.addf %25, %20 : vector<4x1x1xf32>
    %27 = arith.divf %24, %26 : vector<4x1x1xf32>
    %28 = vector.broadcast %27 : vector<4x1x1xf32> to vector<4x1x128xf32>
    %29 = arith.mulf %28, %17 : vector<4x1x128xf32>
    "tpu.trace_start"() <{level = 10 : i32, message = "cqh,ckh->cqk"}> : () -> ()
    %cst_17 = arith.constant dense<0.000000e+00> : vector<4x1x8xf32>
    %30 = tpu.matmul %29, %6, %cst_17 {dimension_numbers = #tpu.dot_dimension_numbers<[2], [2], [1], [1], [0, 0, 0, 1, 1, 1], [0], [0]>} : vector<4x1x128xf32>, vector<4x8x128xf32>, vector<4x1x8xf32> -> vector<4x1x8xf32>
    "tpu.trace_stop"() : () -> ()
    %31 = arith.addf %7, %30 : vector<4x1x8xf32>
    %cst_18 = arith.constant dense<0xFF800000> : vector<4x1xf32>
    %32 = vector.multi_reduction <maximumf>, %31, %cst_18 [2] : vector<4x1x8xf32> to vector<4x1xf32>
    %33 = vector.shape_cast %32 : vector<4x1xf32> to vector<4x1x1xf32>
    %34 = vector.broadcast %33 : vector<4x1x1xf32> to vector<4x1x8xf32>
    %35 = arith.subf %31, %34 : vector<4x1x8xf32>
    %36 = math.exp %35 : vector<4x1x8xf32>
    %cst_19 = arith.constant dense<0.000000e+00> : vector<4x1xf32>
    %37 = vector.multi_reduction <add>, %36, %cst_19 [2] : vector<4x1x8xf32> to vector<4x1xf32>
    %38 = vector.shape_cast %37 : vector<4x1xf32> to vector<4x1x1xf32>
    %39 = vector.broadcast %38 : vector<4x1x1xf32> to vector<4x1x8xf32>
    %40 = arith.divf %36, %39 : vector<4x1x8xf32>
    "tpu.trace_start"() <{level = 10 : i32, message = "cqk,ckh->cqh"}> : () -> ()
    %cst_20 = arith.constant dense<0.000000e+00> : vector<4x1x128xf32>
    %41 = tpu.matmul %40, %6, %cst_20 {dimension_numbers = #tpu.dot_dimension_numbers<[2], [1], [1], [2], [0, 0, 0, 1, 1, 2], [0], [0]>} : vector<4x1x8xf32>, vector<4x8x128xf32>, vector<4x1x128xf32> -> vector<4x1x128xf32>
    "tpu.trace_stop"() : () -> ()
    %42 = arith.mulf %41, %41 : vector<4x1x128xf32>
    %cst_21 = arith.constant dense<0.000000e+00> : vector<4x1xf32>
    %43 = vector.multi_reduction <add>, %42, %cst_21 [2] : vector<4x1x128xf32> to vector<4x1xf32>
    %44 = vector.shape_cast %43 : vector<4x1xf32> to vector<4x1x1xf32>
    %cst_22 = arith.constant 9.99999996E-13 : f32
    %45 = vector.broadcast %cst_22 : f32 to vector<4x1x1xf32>
    %46 = arith.addf %44, %45 : vector<4x1x1xf32>
    %47 = math.rsqrt %46 : vector<4x1x1xf32>
    %48 = arith.mulf %44, %47 : vector<4x1x1xf32>
    %cst_23 = arith.constant 1.000000e+00 : f32
    %49 = vector.broadcast %cst_23 : f32 to vector<4x1x1xf32>
    %50 = arith.addf %49, %44 : vector<4x1x1xf32>
    %51 = arith.divf %48, %50 : vector<4x1x1xf32>
    %52 = vector.broadcast %51 : vector<4x1x1xf32> to vector<4x1x128xf32>
    %53 = arith.mulf %52, %41 : vector<4x1x128xf32>
    "tpu.trace_start"() <{level = 10 : i32, message = "cqh,ckh->cqk"}> : () -> ()
    %cst_24 = arith.constant dense<0.000000e+00> : vector<4x1x8xf32>
    %54 = tpu.matmul %53, %6, %cst_24 {dimension_numbers = #tpu.dot_dimension_numbers<[2], [2], [1], [1], [0, 0, 0, 1, 1, 1], [0], [0]>} : vector<4x1x128xf32>, vector<4x8x128xf32>, vector<4x1x8xf32> -> vector<4x1x8xf32>
    "tpu.trace_stop"() : () -> ()
    %55 = arith.addf %31, %54 : vector<4x1x8xf32>
    %cst_25 = arith.constant dense<0xFF800000> : vector<4x1xf32>
    %56 = vector.multi_reduction <maximumf>, %55, %cst_25 [2] : vector<4x1x8xf32> to vector<4x1xf32>
    %57 = vector.shape_cast %56 : vector<4x1xf32> to vector<4x1x1xf32>
    %58 = vector.broadcast %57 : vector<4x1x1xf32> to vector<4x1x8xf32>
    %59 = arith.subf %55, %58 : vector<4x1x8xf32>
    %60 = math.exp %59 : vector<4x1x8xf32>
    %cst_26 = arith.constant dense<0.000000e+00> : vector<4x1xf32>
    %61 = vector.multi_reduction <add>, %60, %cst_26 [2] : vector<4x1x8xf32> to vector<4x1xf32>
    %62 = vector.shape_cast %61 : vector<4x1xf32> to vector<4x1x1xf32>
    %63 = vector.broadcast %62 : vector<4x1x1xf32> to vector<4x1x8xf32>
    %64 = arith.divf %60, %63 : vector<4x1x8xf32>
    "tpu.trace_start"() <{level = 10 : i32, message = "cqk,ckh->cqh"}> : () -> ()
    %cst_27 = arith.constant dense<0.000000e+00> : vector<4x1x128xf32>
    %65 = tpu.matmul %64, %6, %cst_27 {dimension_numbers = #tpu.dot_dimension_numbers<[2], [1], [1], [2], [0, 0, 0, 1, 1, 2], [0], [0]>} : vector<4x1x8xf32>, vector<4x8x128xf32>, vector<4x1x128xf32> -> vector<4x1x128xf32>
    "tpu.trace_stop"() : () -> ()
    %66 = arith.mulf %65, %65 : vector<4x1x128xf32>
    %cst_28 = arith.constant dense<0.000000e+00> : vector<4x1xf32>
    %67 = vector.multi_reduction <add>, %66, %cst_28 [2] : vector<4x1x128xf32> to vector<4x1xf32>
    %68 = vector.shape_cast %67 : vector<4x1xf32> to vector<4x1x1xf32>
    %cst_29 = arith.constant 9.99999996E-13 : f32
    %69 = vector.broadcast %cst_29 : f32 to vector<4x1x1xf32>
    %70 = arith.addf %68, %69 : vector<4x1x1xf32>
    %71 = math.rsqrt %70 : vector<4x1x1xf32>
    %72 = arith.mulf %68, %71 : vector<4x1x1xf32>
    %cst_30 = arith.constant 1.000000e+00 : f32
    %73 = vector.broadcast %cst_30 : f32 to vector<4x1x1xf32>
    %74 = arith.addf %73, %68 : vector<4x1x1xf32>
    %75 = arith.divf %72, %74 : vector<4x1x1xf32>
    %76 = vector.broadcast %75 : vector<4x1x1xf32> to vector<4x1x128xf32>
    %77 = arith.mulf %76, %65 : vector<4x1x128xf32>
    %78 = vector.shape_cast %77 : vector<4x1x128xf32> to vector<4x128xf32>
    %c0_31 = arith.constant 0 : index
    %c0_32 = arith.constant 0 : index
    %79 = vector.load %arg3[%c0_31, %c0_32] : memref<4x128xf32, #tpu.memory_space<vmem>>, vector<4x128xf32>
    tpu.vector_store %arg3[%c0_31, %c0_32], %78 {strides = array<i32>} : memref<4x128xf32, #tpu.memory_space<vmem>>, vector<4x128xf32>,
    return
  }
  func.func @transform_0(%arg0: i32) -> (i32, i32, i32) {
    %c0_i32 = arith.constant 0 : i32
    %c0_i32_0 = arith.constant 0 : i32
    %c0_i32_1 = arith.constant 0 : i32
    return %arg0, %c0_i32, %c0_i32_0 : i32, i32, i32
  }
  func.func @transform_1(%arg0: i32) -> (i32, i32) {
    %c0_i32 = arith.constant 0 : i32
    %c0_i32_0 = arith.constant 0 : i32
    %c0_i32_1 = arith.constant 0 : i32
    return %c0_i32, %c0_i32_0 : i32, i32
  }
  func.func @transform_2(%arg0: i32) -> (i32, i32) {
    %c0_i32 = arith.constant 0 : i32
    %c0_i32_0 = arith.constant 0 : i32
    return %arg0, %c0_i32 : i32, i32
  }
}

</mosaic_0001>

<bundles_post_ra>
// kernel: tpu_custom_call.1
= control target key start
LH: loop header
LB: loop body
LE: loop exit
PB: predicated region body
PF: predicated region fallthrough
CT: control target
= control target key end

     0   :  { %7 = vsyncpa [#allocation4], 0  ;;  %s2454_s0 = inlined_call_operand.hbm [shape: f32[4,8,128], index: 0, kind: input, shape index: {}]   ;;  %s2455_s1 = inlined_call_operand.hbm [shape: f32[128,128], index: 1, kind: input, shape index: {}]   ;;  %s2456_s2 = inlined_call_operand.hbm [shape: f32[4,128], index: 2, kind: output, shape index: {}]  }
   0x1   :  { %8 = vsyncpa [#allocation7], 0 }
   0x2   :  { %9 = vsyncpa [#allocation5], 0  ;;  %s2246_s9 = smov [#allocation3]   ;;  %s2174_s13 = scalar_lea.hbm %s2454_s0, 512 }
   0x3   :  { %s15_s10 = sshll.u32 %s2246_s9, 4  ;;  %p2175_p0 = scmp.ne.s32.totalorder %s2454_s0, %s2174_s13  ;;  %s16_s10 = int_to_ptr.vmem [resolvable:$true] %s15_s10 }
   0x4   :  { %p2178_p1 = scmp.lt.u32.totalorder %s2174_s13, %s2454_s0 }
   0x6   :  { %p2180_p2 = pnand %p2178_p1, %p2175_p0 }
   0x8   :  { %2183 = shalt.err (!%p2180_p2)
}
   0x9   :  { %s2184_s18 = scalar_lea.vmem %s16_s10, 512  ;;  %p2189_p4 = scmp.lt.s32.totalorder %s16_s10, %s16_s10 }
   0xa   :  { %p2185_p3 = scmp.ne.s32.totalorder %s16_s10, %s2184_s18  ;;  %p2190_p5 = scmp.lt.s32.totalorder %s2184_s18, %s2184_s18 }
   0xc   :  { %p2191_p6 = por %p2190_p5, %p2189_p4 }
   0xe   :  { %p2192_p7 = pnand %p2191_p6, %p2185_p3 }
  0x10   :  { %2195 = shalt.err (!%p2192_p7)
}
  0x11   :  { %s2247_s19 = smov 128   ;;  %s2248_s20 = smov 8  }
  0x12   :  { %21 = dma.hbm_to_vmem [thread:$0]  %s2454_s0, 512, %s16_s10, [#allocation4], %s2247_s19, %s2247_s19, %s2248_s20  }
  0x13   :  { %s2249_s23 = smov [#allocation6]   ;;  %s2196_s27 = scalar_lea.hbm %s2455_s1, 2048 }
  0x14   :  { %s27_s24 = sshll.u32 %s2249_s23, 4  ;;  %p2197_p8 = scmp.ne.s32.totalorder %s2455_s1, %s2196_s27  ;;  %s28_s24 = int_to_ptr.vmem [resolvable:$true] %s27_s24 }
  0x15   :  { %p2200_p9 = scmp.lt.u32.totalorder %s2196_s27, %s2455_s1 }
  0x17   :  { %p2202_p10 = pnand %p2200_p9, %p2197_p8 }
  0x19   :  { %2205 = shalt.err (!%p2202_p10)
}
  0x1a   :  { %s2206_s4 = scalar_lea.vmem %s28_s24, 2048  ;;  %p2211_p12 = scmp.lt.s32.totalorder %s28_s24, %s28_s24 }
  0x1b   :  { %p2207_p11 = scmp.ne.s32.totalorder %s28_s24, %s2206_s4  ;;  %p2212_p13 = scmp.lt.s32.totalorder %s2206_s4, %s2206_s4 }
  0x1d   :  { %p2213_p0 = por %p2212_p13, %p2211_p12 }
  0x1f   :  { %p2214_p1 = pnand %p2213_p0, %p2207_p11 }
  0x21   :  { %2217 = shalt.err (!%p2214_p1)
}
  0x22   :  { %33 = dma.hbm_to_vmem [thread:$0]  %s2455_s1, 2048, %s28_s24, [#allocation7], %s2247_s19, %s2247_s19, %s2248_s20  }
  0x23   :  { %2240 = dma.done.wait [#allocation4], 512  }
  0x24   :  { %2241 = vsyncadd [#allocation4], 4294966784 }
  0x25   :  { %2242 = dma.done.wait [#allocation7], 2048  }
  0x26   :  { %2243 = vsyncadd [#allocation7], 4294965248  ;;  %vm153_vm0 = vcmask 64512   ;;  %v2250_v0 = vmov 0.0   ;;  %v44_v2 = vld [vmem:[#allocation6] sm:$0xff]  ;;  %v45_v3 = vld [vmem:[#allocation6 + $0x8] sm:$0xff] }
  0x27   :  { %v154_v1 = vsel %vm153_vm0, 1.0, %v2250_v0  ;;  %1953 = vmatprep.subr.mxu1 %v2250_v0  ;;  %v46_v4 = vld [vmem:[#allocation6 + $0x10] sm:$0xff]  ;;  %v2053_v5 = vpack.c.bf16 %v45_v3, %v44_v2  ;;  %v47_v6 = vld [vmem:[#allocation6 + $0x18] sm:$0xff]  ;;  %v40_v8 = vld [vmem:[#allocation3] sm:$0xff]  ;;  %vm2251_vm1 = vmmov 0   ;;  %vm446_vm2 = vcmask 1040384  }
  0x28   :  { %155 = vadd.xlane.f32.xlu0 %v154_v1  ;;  %v2057_v7 = vpack.c.bf16 %v47_v6, %v46_v4  ;;  %v48_v9 = vld [vmem:[#allocation6 + $0x20] sm:$0xff]  ;;  %v49_v10 = vld [vmem:[#allocation6 + $0x28] sm:$0xff]  ;;  %1947 = vmatprep.mubr.f32.mxu0 %v40_v8  ;;  %v50_v12 = vld [vmem:[#allocation6 + $0x30] sm:$0xff]  ;;  %vm767_vm3 = vcmask 57344   ;;  %vm1817_vm4 = vcmask 1041409   ;;  %vm1820_vm5 = vcmask 1042434  }
  0x29   :  { %2054 = vmatprep.subr.bf16.mxu0 %v2053_v5  ;;  %v2061_v11 = vpack.c.bf16 %v49_v10, %v48_v9  ;;  %v51_v13 = vld [vmem:[#allocation6 + $0x38] sm:$0xff]  ;;  %v52_v15 = vld [vmem:[#allocation6 + $0x40] sm:$0xff]  ;;  %v53_v16 = vld [vmem:[#allocation6 + $0x48] sm:$0xff]  ;;  %1955 = vmatprep.mubr.msk.f32.mxu1 %vm2251_vm1, %v2250_v0  ;;  %s2252_s1 = smov [#allocation8]   ;;  %vm1823_vm6 = vcmask 1043459  }
  0x2a   :  { %2056 = vmatpush3.bf16.xpose.msra.mxu0 %v2053_v5  ;;  %v2065_v14 = vpack.c.bf16 %v51_v13, %v50_v12  ;;  %v2069_v17 = vpack.c.bf16 %v53_v16, %v52_v15  ;;  %v54_v18 = vld [vmem:[#allocation6 + $0x50] sm:$0xff]  ;;  %v55_v19 = vld [vmem:[#allocation6 + $0x58] sm:$0xff]  ;;  %v56_v21 = vld [vmem:[#allocation6 + $0x60] sm:$0xff]  ;;  %s1833_s6 = sshll.u32 %s2252_s1, 4  ;;  %s1834_s6 = int_to_ptr.vmem [resolvable:$true] %s1833_s6 }
  0x2b   :  { %2058 = vmatprep.subr.bf16.mxu0 %v2057_v7  ;;  %v2073_v20 = vpack.c.bf16 %v55_v19, %v54_v18  ;;  %v57_v22 = vld [vmem:[#allocation6 + $0x68] sm:$0xff]  ;;  %v58_v24 = vld [vmem:[#allocation6 + $0x70] sm:$0xff]  ;;  %v59_v25 = vld [vmem:[#allocation6 + $0x78] sm:$0xff]  ;;  %s2218_s7 = scalar_lea.vmem %s1834_s6, 64  ;;  %p2223_p3 = scmp.lt.s32.totalorder %s1834_s6, %s1834_s6 }
  0x2c   :  { %v2077_v23 = vpack.c.bf16 %v57_v22, %v56_v21  ;;  %v2081_v26 = vpack.c.bf16 %v59_v25, %v58_v24  ;;  %v41_v27 = vld [vmem:[#allocation3 + $0x8] sm:$0xff]  ;;  %v42_v28 = vld [vmem:[#allocation3 + $0x10] sm:$0xff]  ;;  %v43_v29 = vld [vmem:[#allocation3 + $0x18] sm:$0xff]  ;;  %p2219_p2 = scmp.ne.s32.totalorder %s1834_s6, %s2218_s7  ;;  %p2224_p4 = scmp.lt.s32.totalorder %s2218_s7, %s2218_s7 }
  0x2e   :  { %p2225_p5 = por %p2224_p4, %p2223_p3 }
  0x30   :  { %p2226_p6 = pnand %p2225_p5, %p2219_p2 }
  0x32   :  { %2060 = vmatpush3.bf16.xpose.msra.mxu0 %v2057_v7 }
  0x33   :  { %2062 = vmatprep.subr.bf16.mxu0 %v2061_v11 }
  0x3a   :  { %2064 = vmatpush3.bf16.xpose.msra.mxu0 %v2061_v11 }
  0x3b   :  { %2066 = vmatprep.subr.bf16.mxu0 %v2065_v14 }
  0x42   :  { %2068 = vmatpush3.bf16.xpose.msra.mxu0 %v2065_v14 }
  0x43   :  { %2070 = vmatprep.subr.bf16.mxu0 %v2069_v17 }
  0x4a   :  { %2072 = vmatpush3.bf16.xpose.msra.mxu0 %v2069_v17 }
  0x4b   :  { %2074 = vmatprep.subr.bf16.mxu0 %v2073_v20 }
  0x52   :  { %2076 = vmatpush3.bf16.xpose.msra.mxu0 %v2073_v20 }
  0x53   :  { %2078 = vmatprep.subr.bf16.mxu0 %v2077_v23 }
  0x5a   :  { %2080 = vmatpush3.bf16.xpose.msra.mxu0 %v2077_v23 }
  0x5b   :  { %2082 = vmatprep.subr.bf16.mxu0 %v2081_v26 }
  0x62   :  { %2084 = vmatpush3.bf16.xpose.msra.mxu0 %v2081_v26 }
  0x63   :  { %2043 = vmatprep.subr.mxu0 %v2250_v0 }
  0x69   :  { %1948 = vmatmul.mubr.f32.vlgmr.msra.gmra.mrb[0].mxu0 %v41_v27 }
  0x6a   :  { %1950 = vmatprep.mubr.f32.mxu0 %v42_v28 }
  0x6d   :  { %1951 = vmatmul.mubr.f32.gmra.mrb[2].mxu0 %v43_v29 }
  0x6e   :  { %2045 = vmatprep.mubr.msk.f32.mxu0 %vm2251_vm1, %v2250_v0 }
  0xb5   :  { %v156_v30 = vpop.xlane.xlu0 %155 }
  0xb6   :  { %2092 = vrcp.f32 %v156_v30 }
  0xc0   :  { %v2093_v31 = vpop.eup %2092 }
 0x13c   :  { %v2300_v32 = vpop.f32.mrb[0].mxu0 }
 0x13d   :  { %v2302_v33 = vpop.f32.mrb[1].mxu0 }
 0x13e   :  { %1954 = vmatpush3.msra.mxu1 %v2302_v33 }
 0x13f   :  { %1956 = vmatmul.mubr.msk.f32.vlgmr.msra.gmra.mrb[0].mxu1 %vm153_vm0, %v2093_v31  ;;  %1958 = vmatprep.subr.mxu1 %v2250_v0 }
 0x140   :  { %1959 = vmatpush3.msra.mxu1 %v2300_v32  ;;  %v2308_v34 = vpop.f32.mrb[2].mxu0  ;;  %1960 = vmatprep.mubr.msk.f32.mxu1 %vm2251_vm1, %v2250_v0 }
 0x141   :  { %v2312_v35 = vpop.f32.mrb[3].mxu0  ;;  %1963 = vmatprep.subr.mxu1 %v2250_v0 }
 0x142   :  { %2044 = vmatpush3.msra.mxu0 %v2312_v35 }
 0x143   :  { %1961 = vmatmul.mubr.msk.f32.vlgmr.msra.gmra.mrb[2].mxu1 %vm153_vm0, %v2093_v31 }
 0x144   :  { %1964 = vmatpush3.msra.mxu1 %v2312_v35  ;;  %1965 = vmatprep.mubr.msk.f32.mxu1 %vm2251_vm1, %v2250_v0 }
 0x145   :  { %1968 = vmatprep.subr.mxu1 %v2250_v0 }
 0x147   :  { %1966 = vmatmul.mubr.msk.f32.vlgmr.msra.gmra.mrb[4].mxu1 %vm153_vm0, %v2093_v31 }
 0x148   :  { %1969 = vmatpush3.msra.mxu1 %v2308_v34  ;;  %1970 = vmatprep.mubr.msk.f32.mxu1 %vm2251_vm1, %v2250_v0 }
 0x149   :  { %1973 = vmatprep.subr.mxu1 %v2250_v0 }
 0x14b   :  { %1971 = vmatmul.mubr.msk.f32.vlgmr.msra.gmra.mrb[6].mxu1 %vm153_vm0, %v2093_v31 }
 0x14c   :  { %1975 = vmatprep.mubr.msk.f32.mxu1 %vm2251_vm1, %v2250_v0 }
 0x14f   :  { %1974 = vmatpush3.xpose.msra.mxu1 %v2302_v33 }
 0x150   :  { %1978 = vmatprep.subr.mxu1 %v2250_v0 }
 0x212   :  { %v228_v36 = vpop.f32.mrb[0].mxu1 }
 0x213   :  { %v442_v37 = vmul.f32 %v228_v36, %v228_v36  ;;  %v1957_v38 = vpop.f32.mrb[1].mxu1 }
 0x215   :  { %v447_v39 = vsel %vm446_vm2, %v442_v37, 0.0 }
 0x216   :  { %448 = vadd.xlane.f32.xlu0 %v447_v39  ;;  %v298_v40 = vpop.f32.mrb[2].mxu1 }
 0x217   :  { %v1962_v41 = vpop.f32.mrb[3].mxu1  ;;  %v443_v42 = vmul.f32 %v298_v40, %v298_v40 }
 0x219   :  { %v450_v43 = vsel %vm446_vm2, %v443_v42, 0.0 }
 0x21a   :  { %451 = vadd.xlane.f32.xlu1 %v450_v43  ;;  %v368_v44 = vpop.f32.mrb[4].mxu1 }
 0x21b   :  { %v444_v45 = vmul.f32 %v368_v44, %v368_v44  ;;  %v1967_v46 = vpop.f32.mrb[5].mxu1 }
 0x21d   :  { %v453_v47 = vsel %vm446_vm2, %v444_v45, 0.0 }
 0x21e   :  { %454 = vadd.xlane.f32.xlu1 %v453_v47  ;;  %v438_v48 = vpop.f32.mrb[6].mxu1 }
 0x21f   :  { %v445_v49 = vmul.f32 %v438_v48, %v438_v48  ;;  %v1972_v50 = vpop.f32.mrb[7].mxu1 }
 0x221   :  { %v456_v51 = vsel %vm446_vm2, %v445_v49, 0.0 }
 0x222   :  { %457 = vadd.xlane.f32.xlu0 %v456_v51 }
 0x2a3   :  { %v449_v52 = vpop.xlane.xlu0 %448 }
 0x2a4   :  { %v459_v53 = vadd.f32 1e-12, %v449_v52  ;;  %v471_v54 = vadd.f32 1.0, %v449_v52 }
 0x2a6   :  { %2094 = vrsqrt.f32 %v459_v53 }
 0x2a7   :  { %v452_v55 = vpop.xlane.xlu1 %451  ;;  %2096 = vrcp.f32 %v471_v54 }
 0x2a8   :  { %v460_v56 = vadd.f32 1e-12, %v452_v55  ;;  %v472_v57 = vadd.f32 1.0, %v452_v55 }
 0x2aa   :  { %2098 = vrsqrt.f32 %v460_v56 }
 0x2ab   :  { %v455_v58 = vpop.xlane.xlu1 %454  ;;  %2100 = vrcp.f32 %v472_v57 }
 0x2ac   :  { %v461_v59 = vadd.f32 1e-12, %v455_v58  ;;  %v473_v60 = vadd.f32 1.0, %v455_v58 }
 0x2ae   :  { %2102 = vrsqrt.f32 %v461_v59 }
 0x2af   :  { %v458_v61 = vpop.xlane.xlu0 %457  ;;  %2104 = vrcp.f32 %v473_v60 }
 0x2b0   :  { %v2095_v62 = vpop.eup %2094  ;;  %v462_v63 = vadd.f32 1e-12, %v458_v61  ;;  %v474_v1 = vadd.f32 1.0, %v458_v61 }
 0x2b1   :  { %v467_v2 = vmul.f32 %v2095_v62, %v449_v52  ;;  %v2097_v3 = vpop.eup %2096 }
 0x2b2   :  { %2106 = vrsqrt.f32 %v462_v63 }
 0x2b3   :  { %v476_v4 = vmul.f32 %v2097_v3, %v467_v2  ;;  %2108 = vrcp.f32 %v474_v1 }
 0x2b4   :  { %v2099_v5 = vpop.eup %2098 }
 0x2b5   :  { %v468_v6 = vmul.f32 %v2099_v5, %v452_v55  ;;  %v483_v7 = vmul.f32 %v476_v4, %v228_v36  ;;  %v2101_v8 = vpop.eup %2100 }
 0x2b7   :  { %v478_v9 = vmul.f32 %v2101_v8, %v468_v6  ;;  %1976 = vmatmul.mubr.f32.vlgmr.msra.gmra.mrb[8].mxu1 %v483_v7 }
 0x2b8   :  { %v2103_v10 = vpop.eup %2102  ;;  %1979 = vmatpush3.xpose.msra.mxu1 %v2300_v32  ;;  %1980 = vmatprep.mubr.msk.f32.mxu1 %vm2251_vm1, %v2250_v0 }
 0x2b9   :  { %v469_v11 = vmul.f32 %v2103_v10, %v455_v58  ;;  %1983 = vmatprep.subr.mxu1 %v2250_v0  ;;  %v484_v12 = vmul.f32 %v478_v9, %v298_v40  ;;  %v2105_v13 = vpop.eup %2104 }
 0x2bb   :  { %v480_v14 = vmul.f32 %v2105_v13, %v469_v11  ;;  %1981 = vmatmul.mubr.f32.vlgmr.msra.gmra.mrb[10].mxu1 %v484_v12 }
 0x2bc   :  { %v2107_v15 = vpop.eup %2106  ;;  %1984 = vmatpush3.xpose.msra.mxu1 %v2312_v35  ;;  %1985 = vmatprep.mubr.msk.f32.mxu1 %vm2251_vm1, %v2250_v0 }
 0x2bd   :  { %v470_v16 = vmul.f32 %v2107_v15, %v458_v61  ;;  %1988 = vmatprep.subr.mxu1 %v2250_v0  ;;  %v485_v17 = vmul.f32 %v480_v14, %v368_v44  ;;  %v2109_v18 = vpop.eup %2108 }
 0x2bf   :  { %v482_v19 = vmul.f32 %v2109_v18, %v470_v16  ;;  %1986 = vmatmul.mubr.f32.vlgmr.msra.gmra.mrb[12].mxu1 %v485_v17 }
 0x2c0   :  { %1989 = vmatpush3.xpose.msra.mxu1 %v2308_v34  ;;  %1990 = vmatprep.mubr.msk.f32.mxu1 %vm2251_vm1, %v2250_v0 }
 0x2c1   :  { %1993 = vmatprep.subr.mxu1 %v2250_v0  ;;  %v486_v20 = vmul.f32 %v482_v19, %v438_v48 }
 0x2c3   :  { %1991 = vmatmul.mubr.f32.vlgmr.msra.gmra.mrb[14].mxu1 %v486_v20 }
 0x2c4   :  { %1994 = vmatpush3.msra.mxu1 %v2302_v33  ;;  %1995 = vmatprep.mubr.msk.f32.mxu1 %vm2251_vm1, %v2250_v0 }
 0x2c5   :  { %1998 = vmatprep.subr.mxu1 %v2250_v0 }
 0x38a   :  { %v2351_v21 = vpop.f32.mrb[8].mxu1 }
 0x38b   :  { %v1977_v22 = vpop.f32.mrb[9].mxu1  ;;  %v768_v23 = vsel %vm767_vm3, %v2351_v21, -inf }
 0x38c   :  { %769 = vmax.xlane.f32.xlu1 %v768_v23 }
 0x38e   :  { %v2355_v24 = vpop.f32.mrb[10].mxu1 }
 0x38f   :  { %v1982_v25 = vpop.f32.mrb[11].mxu1  ;;  %v771_v26 = vsel %vm767_vm3, %v2355_v24, -inf }
 0x390   :  { %772 = vmax.xlane.f32.xlu0 %v771_v26 }
 0x392   :  { %v2359_v27 = vpop.f32.mrb[12].mxu1 }
 0x393   :  { %v1987_v28 = vpop.f32.mrb[13].mxu1  ;;  %v774_v29 = vsel %vm767_vm3, %v2359_v27, -inf }
 0x394   :  { %775 = vmax.xlane.f32.xlu1 %v774_v29 }
 0x396   :  { %v2363_v30 = vpop.f32.mrb[14].mxu1 }
 0x397   :  { %v1992_v31 = vpop.f32.mrb[15].mxu1  ;;  %v777_v36 = vsel %vm767_vm3, %v2363_v30, -inf }
 0x398   :  { %778 = vmax.xlane.f32.xlu0 %v777_v36 }
 0x419   :  { %v770_v37 = vpop.xlane.xlu1 %769 }
 0x41a   :  { %v780_v38 = vsub.f32 %v2351_v21, %v770_v37 }
 0x41c   :  { %v784_v39 = vmul.f32 1.442695, %v780_v38 }
 0x41d   :  { %v773_v40 = vpop.xlane.xlu0 %772 }
 0x41e   :  { %2110 = vpow2.f32 %v784_v39  ;;  %v781_v41 = vsub.f32 %v2355_v24, %v773_v40 }
 0x420   :  { %v786_v42 = vmul.f32 1.442695, %v781_v41 }
 0x421   :  { %v776_v43 = vpop.xlane.xlu1 %775 }
 0x422   :  { %2112 = vpow2.f32 %v786_v42  ;;  %v782_v44 = vsub.f32 %v2359_v27, %v776_v43 }
 0x424   :  { %v788_v45 = vmul.f32 1.442695, %v782_v44 }
 0x425   :  { %v779_v46 = vpop.xlane.xlu0 %778 }
 0x426   :  { %2114 = vpow2.f32 %v788_v45  ;;  %v783_v47 = vsub.f32 %v2363_v30, %v779_v46 }
 0x428   :  { %v2111_v48 = vpop.eup %2110  ;;  %v790_v49 = vmul.f32 1.442695, %v783_v47 }
 0x429   :  { %v792_v50 = vsel %vm767_vm3, %v2111_v48, 0.0 }
 0x42a   :  { %2116 = vpow2.f32 %v790_v49  ;;  %793 = vadd.xlane.f32.xlu1 %v792_v50 }
 0x42c   :  { %v2113_v51 = vpop.eup %2112 }
 0x42d   :  { %v795_v52 = vsel %vm767_vm3, %v2113_v51, 0.0 }
 0x42e   :  { %796 = vadd.xlane.f32.xlu0 %v795_v52 }
 0x430   :  { %v2115_v53 = vpop.eup %2114 }
 0x431   :  { %v798_v54 = vsel %vm767_vm3, %v2115_v53, 0.0 }
 0x432   :  { %799 = vadd.xlane.f32.xlu1 %v798_v54 }
 0x434   :  { %v2117_v55 = vpop.eup %2116 }
 0x435   :  { %v801_v56 = vsel %vm767_vm3, %v2117_v55, 0.0 }
 0x436   :  { %802 = vadd.xlane.f32.xlu0 %v801_v56 }
 0x4b7   :  { %v794_v57 = vpop.xlane.xlu1 %793 }
 0x4b8   :  { %2118 = vrcp.f32 %v794_v57 }
 0x4bb   :  { %v797_v58 = vpop.xlane.xlu0 %796 }
 0x4bc   :  { %2120 = vrcp.f32 %v797_v58 }
 0x4bf   :  { %v800_v59 = vpop.xlane.xlu1 %799 }
 0x4c0   :  { %2122 = vrcp.f32 %v800_v59 }
 0x4c2   :  { %v2119_v60 = vpop.eup %2118 }
 0x4c3   :  { %v805_v61 = vmul.f32 %v2119_v60, %v2111_v48  ;;  %v803_v62 = vpop.xlane.xlu0 %802 }
 0x4c4   :  { %2124 = vrcp.f32 %v803_v62 }
 0x4c5   :  { %1996 = vmatmul.mubr.msk.f32.vlgmr.msra.gmra.mrb[16].mxu1 %vm153_vm0, %v805_v61 }
 0x4c6   :  { %v2121_v63 = vpop.eup %2120  ;;  %1999 = vmatpush3.msra.mxu1 %v2300_v32  ;;  %2000 = vmatprep.mubr.msk.f32.mxu1 %vm2251_vm1, %v2250_v0 }
 0x4c7   :  { %v807_v1 = vmul.f32 %v2121_v63, %v2113_v51  ;;  %2003 = vmatprep.subr.mxu1 %v2250_v0 }
 0x4c9   :  { %2001 = vmatmul.mubr.msk.f32.vlgmr.msra.gmra.mrb[18].mxu1 %vm153_vm0, %v807_v1 }
 0x4ca   :  { %v2123_v2 = vpop.eup %2122  ;;  %2004 = vmatpush3.msra.mxu1 %v2312_v35  ;;  %2005 = vmatprep.mubr.msk.f32.mxu1 %vm2251_vm1, %v2250_v0 }
 0x4cb   :  { %v809_v3 = vmul.f32 %v2123_v2, %v2115_v53  ;;  %2008 = vmatprep.subr.mxu1 %v2250_v0 }
 0x4cd   :  { %2006 = vmatmul.mubr.msk.f32.vlgmr.msra.gmra.mrb[20].mxu1 %vm153_vm0, %v809_v3 }
 0x4ce   :  { %v2125_v4 = vpop.eup %2124  ;;  %2009 = vmatpush3.msra.mxu1 %v2308_v34  ;;  %2010 = vmatprep.mubr.msk.f32.mxu1 %vm2251_vm1, %v2250_v0 }
 0x4cf   :  { %v811_v5 = vmul.f32 %v2125_v4, %v2117_v55  ;;  %2013 = vmatprep.subr.mxu1 %v2250_v0 }
 0x4d1   :  { %2011 = vmatmul.mubr.msk.f32.vlgmr.msra.gmra.mrb[22].mxu1 %vm153_vm0, %v811_v5 }
 0x4d2   :  { %2015 = vmatprep.mubr.msk.f32.mxu1 %vm2251_vm1, %v2250_v0 }
 0x4d5   :  { %2014 = vmatpush3.xpose.msra.mxu1 %v2302_v33 }
 0x4d6   :  { %2018 = vmatprep.subr.mxu1 %v2250_v0 }
 0x598   :  { %v881_v6 = vpop.f32.mrb[16].mxu1 }
 0x599   :  { %v1104_v7 = vmul.f32 %v881_v6, %v881_v6  ;;  %v1997_v8 = vpop.f32.mrb[17].mxu1 }
 0x59b   :  { %v1108_v9 = vsel %vm446_vm2, %v1104_v7, 0.0 }
 0x59c   :  { %1109 = vadd.xlane.f32.xlu1 %v1108_v9  ;;  %v954_v10 = vpop.f32.mrb[18].mxu1 }
 0x59d   :  { %v1105_v11 = vmul.f32 %v954_v10, %v954_v10  ;;  %v2002_v12 = vpop.f32.mrb[19].mxu1 }
 0x59f   :  { %v1111_v13 = vsel %vm446_vm2, %v1105_v11, 0.0 }
 0x5a0   :  { %1112 = vadd.xlane.f32.xlu0 %v1111_v13  ;;  %v1027_v14 = vpop.f32.mrb[20].mxu1 }
 0x5a1   :  { %v1106_v15 = vmul.f32 %v1027_v14, %v1027_v14  ;;  %v2007_v16 = vpop.f32.mrb[21].mxu1 }
 0x5a3   :  { %v1114_v17 = vsel %vm446_vm2, %v1106_v15, 0.0 }
 0x5a4   :  { %1115 = vadd.xlane.f32.xlu1 %v1114_v17  ;;  %v1100_v18 = vpop.f32.mrb[22].mxu1 }
 0x5a5   :  { %v1107_v19 = vmul.f32 %v1100_v18, %v1100_v18  ;;  %v2012_v20 = vpop.f32.mrb[23].mxu1 }
 0x5a7   :  { %v1117_v22 = vsel %vm446_vm2, %v1107_v19, 0.0 }
 0x5a8   :  { %1118 = vadd.xlane.f32.xlu0 %v1117_v22 }
 0x629   :  { %v1110_v23 = vpop.xlane.xlu1 %1109 }
 0x62a   :  { %v1120_v25 = vadd.f32 1e-12, %v1110_v23  ;;  %v1132_v26 = vadd.f32 1.0, %v1110_v23 }
 0x62c   :  { %2126 = vrsqrt.f32 %v1120_v25 }
 0x62d   :  { %v1113_v28 = vpop.xlane.xlu0 %1112  ;;  %2128 = vrcp.f32 %v1132_v26 }
 0x62e   :  { %v1121_v29 = vadd.f32 1e-12, %v1113_v28  ;;  %v1133_v31 = vadd.f32 1.0, %v1113_v28 }
 0x630   :  { %2130 = vrsqrt.f32 %v1121_v29 }
 0x631   :  { %v1116_v36 = vpop.xlane.xlu1 %1115  ;;  %2132 = vrcp.f32 %v1133_v31 }
 0x632   :  { %v1122_v37 = vadd.f32 1e-12, %v1116_v36  ;;  %v1134_v38 = vadd.f32 1.0, %v1116_v36 }
 0x634   :  { %2134 = vrsqrt.f32 %v1122_v37 }
 0x635   :  { %v1119_v39 = vpop.xlane.xlu0 %1118  ;;  %2136 = vrcp.f32 %v1134_v38 }
 0x636   :  { %v2127_v40 = vpop.eup %2126  ;;  %v1123_v41 = vadd.f32 1e-12, %v1119_v39  ;;  %v1135_v42 = vadd.f32 1.0, %v1119_v39 }
 0x637   :  { %v1128_v43 = vmul.f32 %v2127_v40, %v1110_v23  ;;  %v2129_v44 = vpop.eup %2128 }
 0x638   :  { %2138 = vrsqrt.f32 %v1123_v41 }
 0x639   :  { %v1137_v45 = vmul.f32 %v2129_v44, %v1128_v43  ;;  %2140 = vrcp.f32 %v1135_v42 }
 0x63a   :  { %v2131_v46 = vpop.eup %2130 }
 0x63b   :  { %v1129_v47 = vmul.f32 %v2131_v46, %v1113_v28  ;;  %v1144_v48 = vmul.f32 %v1137_v45, %v881_v6  ;;  %v2133_v49 = vpop.eup %2132 }
 0x63d   :  { %v1139_v50 = vmul.f32 %v2133_v49, %v1129_v47  ;;  %2016 = vmatmul.mubr.f32.vlgmr.msra.gmra.mrb[24].mxu1 %v1144_v48 }
 0x63e   :  { %v2135_v51 = vpop.eup %2134  ;;  %2019 = vmatpush3.xpose.msra.mxu1 %v2300_v32  ;;  %2020 = vmatprep.mubr.msk.f32.mxu1 %vm2251_vm1, %v2250_v0 }
 0x63f   :  { %v1130_v52 = vmul.f32 %v2135_v51, %v1116_v36  ;;  %2023 = vmatprep.subr.mxu1 %v2250_v0  ;;  %v1145_v53 = vmul.f32 %v1139_v50, %v954_v10  ;;  %v2137_v54 = vpop.eup %2136 }
 0x641   :  { %v1141_v55 = vmul.f32 %v2137_v54, %v1130_v52  ;;  %2021 = vmatmul.mubr.f32.vlgmr.msra.gmra.mrb[26].mxu1 %v1145_v53 }
 0x642   :  { %v2139_v56 = vpop.eup %2138  ;;  %2024 = vmatpush3.xpose.msra.mxu1 %v2312_v35  ;;  %2025 = vmatprep.mubr.msk.f32.mxu1 %vm2251_vm1, %v2250_v0 }
 0x643   :  { %v1131_v57 = vmul.f32 %v2139_v56, %v1119_v39  ;;  %2028 = vmatprep.subr.mxu1 %v2250_v0  ;;  %v1146_v58 = vmul.f32 %v1141_v55, %v1027_v14  ;;  %v2141_v59 = vpop.eup %2140 }
 0x645   :  { %v1143_v60 = vmul.f32 %v2141_v59, %v1131_v57  ;;  %2026 = vmatmul.mubr.f32.vlgmr.msra.gmra.mrb[28].mxu1 %v1146_v58 }
 0x646   :  { %2029 = vmatpush3.xpose.msra.mxu1 %v2308_v34  ;;  %2030 = vmatprep.mubr.msk.f32.mxu1 %vm2251_vm1, %v2250_v0 }
 0x647   :  { %2033 = vmatprep.subr.mxu1 %v2250_v0  ;;  %v1147_v61 = vmul.f32 %v1143_v60, %v1100_v18 }
 0x649   :  { %2031 = vmatmul.mubr.f32.vlgmr.msra.gmra.mrb[30].mxu1 %v1147_v61 }
 0x64a   :  { %2034 = vmatpush3.msra.mxu1 %v2302_v33  ;;  %2035 = vmatprep.mubr.msk.f32.mxu1 %vm2251_vm1, %v2250_v0 }
 0x64b   :  { %2038 = vmatprep.subr.mxu1 %v2250_v0 }
 0x710   :  { %v1214_v35 = vpop.f32.mrb[24].mxu1 }
 0x711   :  { %v1428_v62 = vadd.f32 %v1214_v35, %v2351_v21  ;;  %v2017_v63 = vpop.f32.mrb[25].mxu1 }
 0x713   :  { %v1432_v1 = vsel %vm767_vm3, %v1428_v62, -inf }
 0x714   :  { %1433 = vmax.xlane.f32.xlu1 %v1432_v1  ;;  %v1284_v2 = vpop.f32.mrb[26].mxu1 }
 0x715   :  { %v1429_v3 = vadd.f32 %v1284_v2, %v2355_v24  ;;  %v2022_v4 = vpop.f32.mrb[27].mxu1 }
 0x717   :  { %v1435_v5 = vsel %vm767_vm3, %v1429_v3, -inf }
 0x718   :  { %1436 = vmax.xlane.f32.xlu0 %v1435_v5  ;;  %v1354_v33 = vpop.f32.mrb[28].mxu1 }
 0x719   :  { %v1430_v6 = vadd.f32 %v1354_v33, %v2359_v27  ;;  %v2027_v7 = vpop.f32.mrb[29].mxu1 }
 0x71b   :  { %v1438_v8 = vsel %vm767_vm3, %v1430_v6, -inf }
 0x71c   :  { %1439 = vmax.xlane.f32.xlu1 %v1438_v8  ;;  %v1424_v9 = vpop.f32.mrb[30].mxu1 }
 0x71d   :  { %v1431_v21 = vadd.f32 %v1424_v9, %v2363_v30  ;;  %v2032_v10 = vpop.f32.mrb[31].mxu1 }
 0x71f   :  { %v1441_v11 = vsel %vm767_vm3, %v1431_v21, -inf }
 0x720   :  { %1442 = vmax.xlane.f32.xlu0 %v1441_v11 }
 0x7a1   :  { %v1434_v12 = vpop.xlane.xlu1 %1433 }
 0x7a2   :  { %v1444_v24 = vsub.f32 %v1428_v62, %v1434_v12 }
 0x7a4   :  { %v1448_v13 = vmul.f32 1.442695, %v1444_v24 }
 0x7a5   :  { %v1437_v14 = vpop.xlane.xlu0 %1436 }
 0x7a6   :  { %2142 = vpow2.f32 %v1448_v13  ;;  %v1445_v15 = vsub.f32 %v1429_v3, %v1437_v14 }
 0x7a8   :  { %v1450_v16 = vmul.f32 1.442695, %v1445_v15 }
 0x7a9   :  { %v1440_v17 = vpop.xlane.xlu1 %1439 }
 0x7aa   :  { %2144 = vpow2.f32 %v1450_v16  ;;  %v1446_v27 = vsub.f32 %v1430_v6, %v1440_v17 }
 0x7ac   :  { %v1452_v18 = vmul.f32 1.442695, %v1446_v27 }
 0x7ad   :  { %v1443_v19 = vpop.xlane.xlu0 %1442 }
 0x7ae   :  { %2146 = vpow2.f32 %v1452_v18  ;;  %v1447_v20 = vsub.f32 %v1431_v21, %v1443_v19 }
 0x7b0   :  { %v2143_v22 = vpop.eup %2142  ;;  %v1454_v30 = vmul.f32 1.442695, %v1447_v20 }
 0x7b1   :  { %v1456_v23 = vsel %vm767_vm3, %v2143_v22, 0.0 }
 0x7b2   :  { %2148 = vpow2.f32 %v1454_v30  ;;  %1457 = vadd.xlane.f32.xlu1 %v1456_v23 }
 0x7b4   :  { %v2145_v25 = vpop.eup %2144 }
 0x7b5   :  { %v1459_v26 = vsel %vm767_vm3, %v2145_v25, 0.0 }
 0x7b6   :  { %1460 = vadd.xlane.f32.xlu0 %v1459_v26 }
 0x7b8   :  { %v2147_v28 = vpop.eup %2146 }
 0x7b9   :  { %v1462_v29 = vsel %vm767_vm3, %v2147_v28, 0.0 }
 0x7ba   :  { %1463 = vadd.xlane.f32.xlu1 %v1462_v29 }
 0x7bc   :  { %v2149_v31 = vpop.eup %2148 }
 0x7bd   :  { %v1465_v36 = vsel %vm767_vm3, %v2149_v31, 0.0 }
 0x7be   :  { %1466 = vadd.xlane.f32.xlu0 %v1465_v36 }
 0x83f   :  { %v1458_v37 = vpop.xlane.xlu1 %1457 }
 0x840   :  { %2150 = vrcp.f32 %v1458_v37 }
 0x843   :  { %v1461_v38 = vpop.xlane.xlu0 %1460 }
 0x844   :  { %2152 = vrcp.f32 %v1461_v38 }
 0x847   :  { %v1464_v39 = vpop.xlane.xlu1 %1463 }
 0x848   :  { %2154 = vrcp.f32 %v1464_v39 }
 0x84a   :  { %v2151_v40 = vpop.eup %2150 }
 0x84b   :  { %v1469_v41 = vmul.f32 %v2151_v40, %v2143_v22  ;;  %v1467_v42 = vpop.xlane.xlu0 %1466 }
 0x84c   :  { %2156 = vrcp.f32 %v1467_v42 }
 0x84d   :  { %2036 = vmatmul.mubr.msk.f32.vlgmr.msra.gmra.mrb[32].mxu1 %vm153_vm0, %v1469_v41 }
 0x84e   :  { %v2153_v43 = vpop.eup %2152  ;;  %2039 = vmatpush3.msra.mxu1 %v2300_v32  ;;  %2040 = vmatprep.mubr.msk.f32.mxu1 %vm2251_vm1, %v2250_v0 }
 0x84f   :  { %v1471_v44 = vmul.f32 %v2153_v43, %v2145_v25  ;;  %2048 = vmatprep.subr.mxu1 %v2250_v0 }
 0x851   :  { %2041 = vmatmul.mubr.msk.f32.vlgmr.msra.gmra.mrb[34].mxu1 %vm153_vm0, %v1471_v44 }
 0x852   :  { %v2155_v45 = vpop.eup %2154  ;;  %2049 = vmatpush3.msra.mxu1 %v2308_v34  ;;  %2050 = vmatprep.mubr.msk.f32.mxu1 %vm2251_vm1, %v2250_v0 }
 0x853   :  { %v1473_v46 = vmul.f32 %v2155_v45, %v2147_v28 }
 0x855   :  { %2046 = vmatmul.mubr.msk.f32.vlgmr.msra.gmra.mrb[4].mxu0 %vm153_vm0, %v1473_v46 }
 0x856   :  { %v2157_v47 = vpop.eup %2156 }
 0x857   :  { %v1475_v48 = vmul.f32 %v2157_v47, %v2149_v31 }
 0x859   :  { %2051 = vmatmul.mubr.msk.f32.vlgmr.msra.gmra.mrb[36].mxu1 %vm153_vm0, %v1475_v48 }
 0x920   :  { %v1545_v32 = vpop.f32.mrb[32].mxu1 }
 0x921   :  { %v2037_v49 = vpop.f32.mrb[33].mxu1  ;;  %v1768_v53 = vmul.f32 %v1545_v32, %v1545_v32 }
 0x923   :  { %v1772_v57 = vsel %vm446_vm2, %v1768_v53, 0.0 }
 0x924   :  { %v1618_v50 = vpop.f32.mrb[34].mxu1 }
 0x925   :  { %v1769_v51 = vmul.f32 %v1618_v50, %v1618_v50  ;;  %v2042_v52 = vpop.f32.mrb[35].mxu1 }
 0x927   :  { %v1775_v54 = vsel %vm446_vm2, %v1769_v51, 0.0 }
 0x928   :  { %v1691_v55 = vpop.f32.mrb[4].mxu0  ;;  %1776 = vadd.xlane.f32.xlu1 %v1775_v54 }
 0x929   :  { %v1770_v34 = vmul.f32 %v1691_v55, %v1691_v55  ;;  %v2047_v56 = vpop.f32.mrb[5].mxu0 }
 0x92b   :  { %v1778_v0 = vsel %vm446_vm2, %v1770_v34, 0.0 }
 0x92c   :  { %1779 = vadd.xlane.f32.xlu0 %v1778_v0  ;;  %1773 = vadd.xlane.f32.xlu1 %v1772_v57  ;;  %v1764_v58 = vpop.f32.mrb[36].mxu1 }
 0x92d   :  { %v1771_v59 = vmul.f32 %v1764_v58, %v1764_v58  ;;  %v2052_v60 = vpop.f32.mrb[37].mxu1 }
 0x92f   :  { %v1781_v61 = vsel %vm446_vm2, %v1771_v59, 0.0 }
 0x930   :  { %1782 = vadd.xlane.f32.xlu0 %v1781_v61 }
 0x9b5   :  { %v1777_v35 = vpop.xlane.xlu1 %1776 }
 0x9b6   :  { %v1785_v62 = vadd.f32 1e-12, %v1777_v35  ;;  %v1797_v63 = vadd.f32 1.0, %v1777_v35 }
 0x9b8   :  { %2158 = vrsqrt.f32 %v1785_v62 }
 0x9b9   :  { %v1780_v1 = vpop.xlane.xlu0 %1779  ;;  %v1774_v2 = vpop.xlane.xlu1 %1773  ;;  %2160 = vrcp.f32 %v1797_v63 }
 0x9ba   :  { %v1786_v3 = vadd.f32 1e-12, %v1780_v1  ;;  %v1798_v4 = vadd.f32 1.0, %v1780_v1  ;;  %v1784_v5 = vadd.f32 1e-12, %v1774_v2  ;;  %v1796_v33 = vadd.f32 1.0, %v1774_v2 }
 0x9bc   :  { %2162 = vrsqrt.f32 %v1786_v3 }
 0x9bd   :  { %2164 = vrcp.f32 %v1798_v4  ;;  %v1783_v6 = vpop.xlane.xlu0 %1782 }
 0x9be   :  { %2166 = vrsqrt.f32 %v1784_v5  ;;  %v1787_v7 = vadd.f32 1e-12, %v1783_v6  ;;  %v1799_v8 = vadd.f32 1.0, %v1783_v6 }
 0x9bf   :  { %2168 = vrcp.f32 %v1796_v33 }
 0x9c0   :  { %2170 = vrsqrt.f32 %v1787_v7 }
 0x9c1   :  { %2172 = vrcp.f32 %v1799_v8 }
 0x9c2   :  { %v2159_v9 = vpop.eup %2158 }
 0x9c3   :  { %v1793_v21 = vmul.f32 %v2159_v9, %v1777_v35  ;;  %v2161_v10 = vpop.eup %2160 }
 0x9c5   :  { %v1803_v11 = vmul.f32 %v2161_v10, %v1793_v21 }
 0x9c6   :  { %v2163_v12 = vpop.eup %2162 }
 0x9c7   :  { %v2165_v24 = vpop.eup %2164  ;;  %v1794_v13 = vmul.f32 %v2163_v12, %v1780_v1  ;;  %v1809_v16 = vmul.f32 %v1803_v11, %v1618_v50 }
 0x9c8   :  { %v2167_v14 = vpop.eup %2166 }
 0x9c9   :  { %v2169_v15 = vpop.eup %2168  ;;  %v1805_v17 = vmul.f32 %v2165_v24, %v1794_v13  ;;  %v1792_v27 = vmul.f32 %v2167_v14, %v1774_v2  ;;  %v1816_v23 = vrot.slane %v1809_v16, 7 }
 0x9ca   :  { %v2171_v18 = vpop.eup %2170 }
 0x9cb   :  { %v1810_v19 = vmul.f32 %v1805_v17, %v1691_v55  ;;  %v1801_v20 = vmul.f32 %v2169_v15, %v1792_v27  ;;  %v1795_v22 = vmul.f32 %v2171_v18, %v1783_v6  ;;  %v2173_v30 = vpop.eup %2172 }
 0x9cd   :  { %v1819_v25 = vrot.slane %v1810_v19, 6  ;;  %v1808_v26 = vmul.f32 %v1801_v20, %v1545_v32  ;;  %v1807_v28 = vmul.f32 %v2173_v30, %v1795_v22 }
 0x9cf   :  { %v1811_v29 = vmul.f32 %v1807_v28, %v1764_v58  ;;  %v1818_v31 = vsel %vm1817_vm4, %v1816_v23, %v1808_v26 }
 0x9d0   :  { %v1821_v36 = vsel %vm1820_vm5, %v1819_v25, %v1818_v31 }
 0x9d1   :  { %v1822_v37 = vrot.slane %v1811_v29, 5 }
 0x9d3   :  { %v1824_v38 = vsel %vm1823_vm6, %v1822_v37, %v1821_v36 }
 0x9d4   :  { %1826 = vst [vmem:[#allocation8] sm:$0xf] %v1824_v38 }
 0x9d5   :  { %2229 = shalt.err (!%p2226_p6)
}
 0x9d6   :  { %s2230_s10 = scalar_lea.hbm %s2456_s2, 64 }
 0x9d7   :  { %p2231_p7 = scmp.ne.s32.totalorder %s2456_s2, %s2230_s10  ;;  %p2234_p8 = scmp.lt.u32.totalorder %s2230_s10, %s2456_s2 }
 0x9d9   :  { %p2236_p9 = pnand %p2234_p8, %p2231_p7 }
 0x9db   :  { %2239 = shalt.err (!%p2236_p9)
}
 0x9dc   :  { %1836 = dma.vmem_to_hbm [thread:$0]  %s1834_s6, 64, %s2456_s2, [#allocation5]  }
 0x9dd   :  { %2244 = dma.done.wait [#allocation5], 64  }
 0x9de   :  { %2245 = vsyncadd [#allocation5], 4294967232 }
 0x9df   :  { %1840 = vsyncpa [#allocation4], 1 }
 0x9e0   :  { %1841 = vsyncpa [#allocation7], 1 }
 0x9e1   :  { %1842 = vsyncpa [#allocation5], 1 }

</bundles_post_ra>
